<compile_context>
chip_gen: v5e
topology: v5e:2x2
jax: 0.10.0
libtpu: 0.0.40
codegen_flags: <defaults>
</compile_context>

<pallas_src>
import functools

import numpy as np
import jax
import jax.numpy as jnp
from jax import lax
from jax.experimental import pallas as pl
from jax.experimental.pallas import tpu as pltpu

POSITIVE_LO, POSITIVE_HI = 1, 3      # positive classes {1, 2, 3}
NEGATIVE_CLASS = 0

_VMEM = pl.BlockSpec(memory_space=pltpu.MemorySpace.VMEM)


# ------------------------------ Pallas kernel ------------------------------ #

def _contrastive_kernel(emb_t_ref, edges_ref, masks_ref, out_ref, *, margin):
    """out = 0.5*(mean_pos ||e_s - e_d||^2 + mean_selneg relu(margin - ||.||)^2).

    emb_t_ref : (D, N) embeddings, transposed so the node axis N is on lanes.
    edges_ref : (2, E) int32, row 0 = src node, row 1 = dst node.
    masks_ref : (2, E) float32, row 0 = pos-pair mask, row 1 = selected-neg mask.
    out_ref   : (1, 1) float32 packed scalar loss.
    """
    emb_t = emb_t_ref[...].astype(jnp.float32)                 # (D, N)
    n = emb_t.shape[1]
    e = edges_ref.shape[1]

    src = edges_ref[0:1, :]                                    # (1, E)
    dst = edges_ref[1:2, :]                                    # (1, E)

    # Signed one-hot selection matrix: sel[n, e] = [n == src_e] - [n == dst_e].
    node = lax.broadcasted_iota(jnp.int32, (n, e), 0)          # (N, E)
    sel = (node == src).astype(jnp.float32) - (node == dst).astype(jnp.float32)

    # In-kernel gather + subtract on the MXU: diff[:, e] = emb[src_e] - emb[dst_e].
    diff = jnp.dot(emb_t, sel, preferred_element_type=jnp.float32)   # (D, E)

    sq = jnp.sum(diff * diff, axis=0, keepdims=True)           # (1, E) lane-dense

    pos_m = masks_ref[0:1, :]                                   # (1, E)
    neg_m = masks_ref[1:2, :]                                   # (1, E)

    pos_sum = jnp.sum(sq * pos_m, axis=1, keepdims=True)        # (1, 1)
    cnt_pos = jnp.sum(pos_m, axis=1, keepdims=True)

    dist = jnp.sqrt(sq)
    hinge = jnp.maximum(margin - dist, 0.0)
    neg_sum = jnp.sum(hinge * hinge * neg_m, axis=1, keepdims=True)
    cnt_neg = jnp.sum(neg_m, axis=1, keepdims=True)

    # Guard empty selections (torch would NaN on the mean of an empty tensor).
    pos_loss = pos_sum / jnp.maximum(cnt_pos, 1.0)
    neg_loss = neg_sum / jnp.maximum(cnt_neg, 1.0)
    out_ref[...] = 0.5 * (pos_loss + neg_loss)


# ------------------------------ JAX wrapper -------------------------------- #

def _select_masks(labels, edges, key):
    """Fixed-capacity (static-shape) pos / subsampled-neg edge masks."""
    src, dst = edges[0], edges[1]
    lab_s = labels[src]
    lab_d = labels[dst]
    s_pos = (lab_s >= POSITIVE_LO) & (lab_s <= POSITIVE_HI)
    d_pos = (lab_d >= POSITIVE_LO) & (lab_d <= POSITIVE_HI)
    pos_mask = s_pos & d_pos
    neg_mask = (s_pos & (lab_d == NEGATIVE_CLASS)) | (d_pos & (lab_s == NEGATIVE_CLASS))

    num_pos = jnp.sum(pos_mask.astype(jnp.int32))
    # TODO(synk): torch uses torch.randperm (host RNG); here a jax.random key
    # drives an equivalent uniform random subsample without replacement.
    r = jax.random.uniform(key, (edges.shape[1],))
    keyed = jnp.where(neg_mask, r, jnp.inf)           # negatives sort first
    rank = jnp.argsort(jnp.argsort(keyed))            # random rank among negatives
    sel_neg = neg_mask & (rank < num_pos)             # |sel| = min(num_pos, num_neg)
    return pos_mask, sel_neg


@functools.partial(jax.jit, static_argnames=("margin",))
def contrastive_loss(embeddings, labels, edges, key, margin=1.0):
    labels = labels.astype(jnp.int32)
    edges = edges.astype(jnp.int32)
    pos_mask, sel_neg = _select_masks(labels, edges, key)
    masks = jnp.stack([pos_mask, sel_neg]).astype(jnp.float32)      # (2, E) packed

    out = pl.pallas_call(
        functools.partial(_contrastive_kernel, margin=float(margin)),
        out_shape=jax.ShapeDtypeStruct((1, 1), jnp.float32),
        in_specs=[_VMEM, _VMEM, _VMEM],
        out_specs=_VMEM,
    )(embeddings.T, edges, masks)   # .T = layout plumbing; dtype cast happens in-kernel
    return out[0, 0]


# ----------------------------- References ----------------------------------- #

def _reference_masked(embeddings, labels, edges, key, margin):
    """Pure-JAX masked reference (same selection masks as the kernel path)."""
    pos_mask, sel_neg = _select_masks(labels, edges, key)
    d = embeddings[edges[0]].astype(jnp.float32) - embeddings[edges[1]].astype(jnp.float32)
    sq = jnp.sum(d * d, axis=1)
    pos_loss = jnp.sum(jnp.where(pos_mask, sq, 0.0)) / jnp.maximum(jnp.sum(pos_mask), 1)
    hinge = jnp.maximum(margin - jnp.sqrt(sq), 0.0)
    neg_loss = jnp.sum(jnp.where(sel_neg, hinge ** 2, 0.0)) / jnp.maximum(jnp.sum(sel_neg), 1)
    return 0.5 * (pos_loss + neg_loss)


def _reference_torch_style(embeddings, labels, edges, key, margin):
    """Numpy reference mirroring the torch boolean-indexing / mean formulation."""
    pos_mask, sel_neg = (np.asarray(m) for m in _select_masks(labels, edges, key))
    emb = np.asarray(embeddings, dtype=np.float32)
    edges_np = np.asarray(edges)
    pos_pairs = edges_np[:, pos_mask]
    neg_pairs = edges_np[:, sel_neg]
    pos_d = np.linalg.norm(emb[pos_pairs[0]] - emb[pos_pairs[1]], axis=1)
    neg_d = np.linalg.norm(emb[neg_pairs[0]] - emb[neg_pairs[1]], axis=1)
    pos_loss = np.mean(pos_d ** 2)
    neg_loss = np.mean(np.clip(margin - neg_d, 0.0, None) ** 2)
    return 0.5 * (pos_loss + neg_loss)


# --------------------------------- main ------------------------------------- #

if __name__ == "__main__":
    key = jax.random.PRNGKey(0)
    k_emb, k_edge, k_perm = jax.random.split(key, 3)

    N, D, E = 16, 32, 24
    margin = 1.0

    # Deterministic labels with a mix of unlabeled (0) and positive {1,2,3} nodes.
    labels = jnp.array([0, 1, 2, 3, 0, 1, 2, 3, 0, 0, 1, 2, 0, 3, 1, 0],
                       dtype=jnp.int32)
    embeddings = jax.random.normal(k_emb, (N, D), dtype=jnp.float32)

    # Edges as (2, E): guaranteed pos-pos / pos-neg pairs plus random edges.
    guaranteed = jnp.array([[1, 2], [3, 5], [1, 0], [4, 7]], dtype=jnp.int32)
    random_edges = jax.random.randint(k_edge, (E - 4, 2), 0, N, dtype=jnp.int32)
    edges = jnp.concatenate([guaranteed, random_edges], axis=0).T     # (2, E)

    loss = contrastive_loss(embeddings, labels, edges, k_perm, margin=margin)
    loss = jax.block_until_ready(loss)

    ref_masked = _reference_masked(embeddings, labels, edges.astype(jnp.int32),
                                   k_perm, margin)
    ref_torch = _reference_torch_style(embeddings, labels, edges.astype(jnp.int32),
                                       k_perm, margin)

    np.testing.assert_allclose(np.asarray(loss), np.asarray(ref_masked),
                               rtol=1e-3, atol=1e-5)
    np.testing.assert_allclose(np.asarray(loss), np.asarray(ref_torch),
                               rtol=1e-3, atol=1e-5)

    print("KERNEL_OK")
</pallas_src>

<mosaic_0001>
module attributes {stable_mosaic.version = 11 : i64} {
  func.func @_contrastive_kernel(%arg0: memref<32x16xf32, #tpu.memory_space<vmem>>, %arg1: memref<2x24xi32, #tpu.memory_space<vmem>>, %arg2: memref<2x24xf32, #tpu.memory_space<vmem>>, %arg3: memref<1x1xf32, #tpu.memory_space<vmem>>) attributes {dimension_semantics = [], scalar_prefetch = 0 : i64, scratch_operands = 0 : i64, tpu.core_type = #tpu.core_type<tc>} {
    %c0 = arith.constant 0 : index
    %c0_0 = arith.constant 0 : index
    %0 = vector.load %arg0[%c0, %c0_0] : memref<32x16xf32, #tpu.memory_space<vmem>>, vector<32x16xf32>
    %c0_1 = arith.constant 0 : index
    %c0_2 = arith.constant 0 : index
    %1 = vector.load %arg1[%c0_1, %c0_2] : memref<2x24xi32, #tpu.memory_space<vmem>>, vector<1x24xi32>
    %c1 = arith.constant 1 : index
    %c0_3 = arith.constant 0 : index
    %2 = vector.load %arg1[%c1, %c0_3] : memref<2x24xi32, #tpu.memory_space<vmem>>, vector<1x24xi32>
    %3 = tpu.iota {dimensions = array<i32: 0>} : vector<16x24xi32>
    %4 = vector.broadcast %1 : vector<1x24xi32> to vector<16x24xi32>
    %5 = arith.cmpi eq, %3, %4 : vector<16x24xi32>
    %6 = arith.extui %5 : vector<16x24xi1> to vector<16x24xi32>
    %7 = arith.sitofp %6 : vector<16x24xi32> to vector<16x24xf32>
    %8 = vector.broadcast %2 : vector<1x24xi32> to vector<16x24xi32>
    %9 = arith.cmpi eq, %3, %8 : vector<16x24xi32>
    %10 = arith.extui %9 : vector<16x24xi1> to vector<16x24xi32>
    %11 = arith.sitofp %10 : vector<16x24xi32> to vector<16x24xf32>
    %12 = arith.subf %7, %11 : vector<16x24xf32>
    %cst = arith.constant dense<0.000000e+00> : vector<32x24xf32>
    %13 = tpu.matmul %0, %12, %cst {dimension_numbers = #tpu.dot_dimension_numbers<[1], [0], [0], [1], [0, 0, 1, 1], [], []>} : vector<32x16xf32>, vector<16x24xf32>, vector<32x24xf32> -> vector<32x24xf32>
    %14 = arith.mulf %13, %13 : vector<32x24xf32>
    %cst_4 = arith.constant dense<0.000000e+00> : vector<24xf32>
    %15 = vector.multi_reduction <add>, %14, %cst_4 [0] : vector<32x24xf32> to vector<24xf32>
    %16 = vector.shape_cast %15 : vector<24xf32> to vector<1x24xf32>
    %c0_5 = arith.constant 0 : index
    %c0_6 = arith.constant 0 : index
    %17 = vector.load %arg2[%c0_5, %c0_6] : memref<2x24xf32, #tpu.memory_space<vmem>>, vector<1x24xf32>
    %c1_7 = arith.constant 1 : index
    %c0_8 = arith.constant 0 : index
    %18 = vector.load %arg2[%c1_7, %c0_8] : memref<2x24xf32, #tpu.memory_space<vmem>>, vector<1x24xf32>
    %19 = arith.mulf %16, %17 : vector<1x24xf32>
    %cst_9 = arith.constant dense<0.000000e+00> : vector<1xf32>
    %20 = vector.multi_reduction <add>, %19, %cst_9 [1] : vector<1x24xf32> to vector<1xf32>
    %21 = vector.shape_cast %20 : vector<1xf32> to vector<1x1xf32>
    %cst_10 = arith.constant dense<0.000000e+00> : vector<1xf32>
    %22 = vector.multi_reduction <add>, %17, %cst_10 [1] : vector<1x24xf32> to vector<1xf32>
    %23 = vector.shape_cast %22 : vector<1xf32> to vector<1x1xf32>
    %24 = math.sqrt %16 : vector<1x24xf32>
    %cst_11 = arith.constant 1.000000e+00 : f32
    %25 = vector.broadcast %cst_11 : f32 to vector<1x24xf32>
    %26 = arith.subf %25, %24 : vector<1x24xf32>
    %cst_12 = arith.constant 0.000000e+00 : f32
    %27 = vector.broadcast %cst_12 : f32 to vector<1x24xf32>
    %28 = arith.maximumf %26, %27 : vector<1x24xf32>
    %29 = arith.mulf %28, %28 : vector<1x24xf32>
    %30 = arith.mulf %29, %18 : vector<1x24xf32>
    %cst_13 = arith.constant dense<0.000000e+00> : vector<1xf32>
    %31 = vector.multi_reduction <add>, %30, %cst_13 [1] : vector<1x24xf32> to vector<1xf32>
    %32 = vector.shape_cast %31 : vector<1xf32> to vector<1x1xf32>
    %cst_14 = arith.constant dense<0.000000e+00> : vector<1xf32>
    %33 = vector.multi_reduction <add>, %18, %cst_14 [1] : vector<1x24xf32> to vector<1xf32>
    %34 = vector.shape_cast %33 : vector<1xf32> to vector<1x1xf32>
    %cst_15 = arith.constant 1.000000e+00 : f32
    %35 = vector.broadcast %cst_15 : f32 to vector<1x1xf32>
    %36 = arith.maximumf %23, %35 : vector<1x1xf32>
    %37 = arith.divf %21, %36 : vector<1x1xf32>
    %cst_16 = arith.constant 1.000000e+00 : f32
    %38 = vector.broadcast %cst_16 : f32 to vector<1x1xf32>
    %39 = arith.maximumf %34, %38 : vector<1x1xf32>
    %40 = arith.divf %32, %39 : vector<1x1xf32>
    %41 = arith.addf %37, %40 : vector<1x1xf32>
    %cst_17 = arith.constant 5.000000e-01 : f32
    %42 = vector.broadcast %cst_17 : f32 to vector<1x1xf32>
    %43 = arith.mulf %42, %41 : vector<1x1xf32>
    %c0_18 = arith.constant 0 : index
    %c0_19 = arith.constant 0 : index
    %44 = vector.load %arg3[%c0_18, %c0_19] : memref<1x1xf32, #tpu.memory_space<vmem>>, vector<1x1xf32>
    tpu.vector_store %arg3[%c0_18, %c0_19], %43 {strides = array<i32>} : memref<1x1xf32, #tpu.memory_space<vmem>>, vector<1x1xf32>,
    return
  }
}

</mosaic_0001>

<bundles_post_ra>
// kernel: contrastive_loss.1
= control target key start
LH: loop header
LB: loop body
LE: loop exit
PB: predicated region body
PF: predicated region fallthrough
CT: control target
= control target key end

     0   :  { %v21_v0 = vlaneseq  ;;  %s287_s0 = inlined_call_operand.vmem [shape: f32[32,16], index: 0, kind: input, shape index: {}]   ;;  %s288_s1 = inlined_call_operand.vmem [shape: s32[2,24], index: 1, kind: input, shape index: {}]   ;;  %s289_s2 = inlined_call_operand.vmem [shape: f32[2,24], index: 2, kind: input, shape index: {}]   ;;  %s290_s3 = inlined_call_operand.hbm [shape: f32[1,1], index: 3, kind: output, shape index: {}]  }
   0x1   :  { %v200_v1 = vld [vmem:[%s288_s1] ss:$0 sm:$0xff]  ;;  %v201_v3 = vld [vmem:[%s288_s1 + $0x1] ss:$0 sm:$0xff] }
   0x2   :  { %v22_v2 = vshrl.u32 %v21_v0, 7 }
   0x3   :  { %8 = vsyncpa [#allocation3], 0  ;;  %v234_v5 = vmov 0.0   ;;  %v17_v12 = vld [vmem:[%s287_s0 + $0x10] sm:$0xff]  ;;  %vm40_vm4 = vcmask 130048   ;;  %v18_v13 = vld [vmem:[%s287_s0 + $0x18] sm:$0xff] }
   0x4   :  { %v23_v4 = vadd.s32 8, %v22_v2  ;;  %vm25_vm0 = vcmp.eq.s32.totalorder %v22_v2, %v200_v1  ;;  %vm32_vm1 = vcmp.eq.s32.totalorder %v22_v2, %v201_v3  ;;  %v15_v14 = vld [vmem:[%s287_s0] sm:$0xff]  ;;  %v16_v15 = vld [vmem:[%s287_s0 + $0x8] sm:$0xff]  ;;  %vm103_vm5 = vcmask 188416   ;;  %s235_s0 = smov [#allocation2]   ;;  %s175_s29 = sshll.u32 %s290_s3, 4  ;;  %s176_s29 = int_to_ptr.hbm [resolvable:$true] %s175_s29 }
   0x5   :  { %v184_v6 = vsel %vm25_vm0, 1.0, %v234_v5  ;;  %v186_v7 = vsel %vm32_vm1, 1.0, %v234_v5  ;;  %v100_v16 = vld [vmem:[%s289_s2] sm:$0x1]  ;;  %v101_v18 = vld [vmem:[%s289_s2 + $0x1] sm:$0x1] }
   0x6   :  { %vm26_vm2 = vcmp.eq.s32.totalorder %v23_v4, %v200_v1  ;;  %vm33_vm3 = vcmp.eq.s32.totalorder %v23_v4, %v201_v3  ;;  %v38_v11 = vsub.f32 %v184_v6, %v186_v7  ;;  %v107_v17 = vsel %vm103_vm5, %v100_v16, 0.0  ;;  %s173_s2 = sshll.u32 %s235_s0, 4  ;;  %s174_s2 = int_to_ptr.vmem [resolvable:$true] %s173_s2 }
   0x7   :  { %v185_v8 = vsel %vm26_vm2, 1.0, %v234_v5  ;;  %v187_v9 = vsel %vm33_vm3, 1.0, %v234_v5  ;;  %108 = vadd.xlane.f32.xlu0 %v107_v17  ;;  %v129_v19 = vsel %vm103_vm5, %v101_v18, 0.0  ;;  %vm86_vm6 = vcmask 195584  }
   0x8   :  { %v39_v10 = vsub.f32 %v185_v8, %v187_v9  ;;  %vm166_vm1 = vcmask 0  }
   0xa   :  { %193 = vmatpush.msra.mxu2 %v39_v10  ;;  %194 = vmatpush.msra.mxu3 %v39_v10 }
   0xb   :  { %67 = vmatpush.msra.mxu0 %v39_v10  ;;  %192 = vmatpush.msra.mxu1 %v39_v10 }
   0xc   :  { %196 = vmatpush.msra.mxu2 %v38_v11  ;;  %197 = vmatpush.msra.mxu3 %v38_v11 }
   0xd   :  { %190 = vmatmul.msk.f32.vlgmr.msra.gmra.mxu2 %vm40_vm4, %v17_v12  ;;  %191 = vmatmul.msk.f32.vlgmr.msra.gmra.mxu3 %vm40_vm4, %v18_v13 }
   0xe   :  { %68 = vmatpush.msra.mxu0 %v38_v11  ;;  %195 = vmatpush.msra.mxu1 %v38_v11 }
   0xf   :  { %188 = vmatmul.msk.f32.vlgmr.msra.gmra.mxu0 %vm40_vm4, %v15_v14  ;;  %189 = vmatmul.msk.f32.vlgmr.msra.gmra.mxu1 %vm40_vm4, %v16_v15 }
  0x10   :  { %130 = vadd.xlane.f32.xlu0 %v129_v19 }
  0x7a   :  { %v109_v58 = vpop.xlane.xlu0 %108 }
  0x7b   :  { %v132_v60 = vmax.f32 %v109_v58, 1.0 }
  0x7d   :  { %vm138_vm9 = vweird.f32 %v132_v60  ;;  %v144_v6 = vand.u32 2147483648, %v132_v60  ;;  %v142_v8 = vand.u32 2147483647, %v132_v60 }
  0x7f   :  { %v145_v13 = vor.u32 1.1754944e-38, %v144_v6  ;;  %vm143_vm15 = vcmp.eq.f32.partialorder %v142_v8, 8.507059e+37 }
  0x83   :  { %v131_v59 = vpop.xlane.xlu0 %130 }
  0x84   :  { %v148_v61 = vmax.f32 %v131_v59, 1.0 }
  0x86   :  { %vm154_vm11 = vweird.f32 %v148_v61  ;;  %v160_v10 = vand.u32 2147483648, %v148_v61  ;;  %v158_v12 = vand.u32 2147483647, %v148_v61 }
  0x88   :  { %v161_v15 = vor.u32 1.1754944e-38, %v160_v10  ;;  %vm159_vm0 = vcmp.eq.f32.partialorder %v158_v12, 8.507059e+37 }
  0x8c   :  { %v70_v20 = vpop.f32.mrf.mxu0  ;;  %v73_v21 = vpop.f32.mrf.mxu1 }
  0x8d   :  { %v82_v22 = vmul.f32 %v70_v20, %v70_v20  ;;  %v83_v23 = vmul.f32 %v73_v21, %v73_v21 }
  0x8f   :  { %v87_v24 = vsel %vm86_vm6, %v82_v22, 0.0  ;;  %v88_v25 = vsel %vm86_vm6, %v83_v23, 0.0 }
  0x90   :  { %v89_v26 = vadd.f32 %v88_v25, %v87_v24  ;;  %v76_v27 = vpop.f32.mrf.mxu2  ;;  %v79_v28 = vpop.f32.mrf.mxu3 }
  0x91   :  { %v84_v29 = vmul.f32 %v76_v27, %v76_v27  ;;  %v85_v30 = vmul.f32 %v79_v28, %v79_v28 }
  0x93   :  { %v90_v31 = vsel %vm86_vm6, %v84_v29, 0.0  ;;  %v92_v32 = vsel %vm86_vm6, %v85_v30, 0.0 }
  0x94   :  { %v91_v33 = vadd.f32 %v90_v31, %v89_v26 }
  0x96   :  { %v93_v34 = vadd.f32 %v92_v32, %v91_v33 }
  0x98   :  { %v94_v35 = vrot.slane %v93_v34, 4 }
  0x9a   :  { %v95_v36 = vadd.f32 %v94_v35, %v93_v34 }
  0x9c   :  { %v96_v37 = vrot.slane %v95_v36, 2 }
  0x9e   :  { %v97_v38 = vadd.f32 %v96_v37, %v95_v36 }
  0xa0   :  { %v98_v39 = vrot.slane %v97_v38, 1 }
  0xa2   :  { %v99_v40 = vadd.f32 %v98_v39, %v97_v38 }
  0xa4   :  { %v102_v41 = vmul.f32 %v100_v16, %v99_v40  ;;  %202 = vrsqrt.f32 %v99_v40  ;;  %vm117_vm7 = vcmp.eq.f32.partialorder %v99_v40, inf  ;;  %v120_v50 = vand.u32 2147483648, %v99_v40 }
  0xa5   :  { %vm119_vm8 = vcmp.eq.f32.partialorder %v99_v40, 0.0  ;;  %204 = vrcp.f32 %v132_v60 }
  0xa6   :  { %v104_v42 = vsel %vm103_vm5, %v102_v41, 0.0  ;;  %206 = vrcp.f32 %v148_v61 }
  0xa7   :  { %105 = vadd.xlane.f32.xlu1 %v104_v42 }
  0xaa   :  { %v203_v43 = vpop.eup %202 }
  0xab   :  { %v111_v44 = vmul.f32 %v203_v43, %v99_v40  ;;  %v205_v62 = vpop.eup %204 }
  0xac   :  { %v207_v63 = vpop.eup %206  ;;  %v134_v0 = vmul.f32 %v205_v62, %v132_v60  ;;  %vm139_vm10 = vweird.f32 %v205_v62 }
  0xad   :  { %v112_v45 = vmul.f32 %v203_v43, %v111_v44  ;;  %v150_v1 = vmul.f32 %v207_v63, %v148_v61  ;;  %vm155_vm12 = vweird.f32 %v207_v63  ;;  %vm140_vm13 = vmor %vm138_vm9, %vm139_vm10 }
  0xae   :  { %v135_v2 = vsub.f32 1.0, %v134_v0  ;;  %vm156_vm14 = vmor %vm154_vm11, %vm155_vm12 }
  0xaf   :  { %v113_v46 = vmul.f32 0.5, %v112_v45  ;;  %v151_v3 = vsub.f32 1.0, %v150_v1 }
  0xb0   :  { %v136_v4 = vmul.f32 %v205_v62, %v135_v2 }
  0xb1   :  { %v114_v47 = vsub.f32 1.5, %v113_v46  ;;  %v152_v5 = vmul.f32 %v207_v63, %v151_v3 }
  0xb2   :  { %v137_v7 = vadd.f32 %v205_v62, %v136_v4 }
  0xb3   :  { %v115_v48 = vmul.f32 %v203_v43, %v114_v47  ;;  %v153_v11 = vadd.f32 %v207_v63, %v152_v5 }
  0xb4   :  { %v141_v14 = vsel %vm140_vm13, %v205_v62, %v137_v7 }
  0xb5   :  { %v116_v49 = vmul.f32 %v115_v48, %v99_v40  ;;  %v157_v16 = vsel %vm156_vm14, %v207_v63, %v153_v11  ;;  %v146_v17 = vsel %vm143_vm15, %v145_v13, %v141_v14 }
  0xb7   :  { %v118_v51 = vsel %vm117_vm7, %v99_v40, %v116_v49 }
  0xb8   :  { %v121_v52 = vsel %vm119_vm8, %v120_v50, %v118_v51 }
  0xb9   :  { %v122_v53 = vsub.f32 1.0, %v121_v52 }
  0xbb   :  { %v123_v54 = vmax.f32 %v122_v53, 0.0 }
  0xbd   :  { %v124_v55 = vmul.f32 %v123_v54, %v123_v54 }
  0xbf   :  { %v125_v56 = vmul.f32 %v124_v55, %v101_v18  ;;  %v162_v18 = vsel %vm159_vm0, %v161_v15, %v157_v16 }
  0xc1   :  { %v126_v57 = vsel %vm103_vm5, %v125_v56, 0.0 }
  0xc2   :  { %127 = vadd.xlane.f32.xlu1 %v126_v57 }
 0x11a   :  { %v106_v9 = vpop.xlane.xlu1 %105 }
 0x11b   :  { %v147_v20 = vmul.f32 %v146_v17, %v106_v9 }
 0x135   :  { %v128_v19 = vpop.xlane.xlu1 %127 }
 0x136   :  { %v163_v21 = vmul.f32 %v162_v18, %v128_v19 }
 0x138   :  { %v164_v22 = vadd.f32 %v163_v21, %v147_v20 }
 0x13a   :  { %v165_v23 = vmul.f32 0.5, %v164_v22 }
 0x13c   :  { %167 = vst.msk [vmem:[#allocation2] sm:$0x1] %vm166_vm1, %v165_v23 }
 0x13d   :  { %178 = dma.vmem_to_hbm [thread:$0]  %s174_s2, 16, %s176_s29, [#allocation3]  }
 0x13e   :  { %232 = dma.done.wait [#allocation3], 16  }
 0x13f   :  { %233 = vsyncadd [#allocation3], 4294967280 }
 0x140   :  { %183 = vsyncpa [#allocation3], 1 }

</bundles_post_ra>
